<compile_context>
chip_gen: v7x
topology: tpu7x:2x2x1
jax: 0.10.0
libtpu: 0.0.40
codegen_flags: <defaults>
</compile_context>

<pallas_src>
import functools

import jax
import jax.numpy as jnp
from jax.experimental import pallas as pl
from jax.experimental.pallas import tpu as pltpu


# ----------------------------------------------------------------------------
# Tiling helpers / compiler params
# ----------------------------------------------------------------------------
VMEM_LIMIT_BYTES = 48 * 1024 * 1024          # safe on v7x (64 MiB physical)
MATMUL_ROW_TILE = 256                        # sweep up to 512-1024 on v6e
DW_BLOCK_BYTES = 4 << 20                     # per-block budget for dw taps


def _cparams(semantics):
    return pltpu.CompilerParams(dimension_semantics=semantics,
                                vmem_limit_bytes=VMEM_LIMIT_BYTES)


def _pad128(c):
    return ((c + 127) // 128) * 128


def _row_tile(m, max_rows):
    # Tile along a non-reduced row axis (partial last block is safe).
    if m <= max_rows:
        return m
    return max(8, (max_rows // 8) * 8)


def _reduce_tile(m, max_rows):
    # Tile along a reduced axis: must divide m exactly (or be the full dim).
    if m <= max_rows:
        return m
    t = (max_rows // 8) * 8
    while t >= 8:
        if m % t == 0:
            return t
        t -= 8
    return m


def _dw_row_tile(m, taps, c, max_bytes=DW_BLOCK_BYTES, max_rows=256):
    per_row = taps * c * 4
    rows = max(8, min(max_rows, (max_bytes // max(per_row, 1)) // 8 * 8))
    return m if m <= rows else rows


# ----------------------------------------------------------------------------
# Pallas kernels
# ----------------------------------------------------------------------------
def _apply_act(y, act):
    if act == "silu":
        return y * jax.nn.sigmoid(y)
    if act == "sigmoid":
        return jax.nn.sigmoid(y)
    return y


def _matmul_affine_kernel(x_ref, w_ref, s_ref, b_ref, o_ref, *, act):
    # [TM, K] @ [K, N] on the MXU in bf16, fused per-channel BN affine + act.
    x = x_ref[...].astype(jnp.bfloat16)
    acc = jnp.dot(x, w_ref[...], preferred_element_type=jnp.float32)
    o_ref[...] = _apply_act(acc * s_ref[...] + b_ref[...], act)


def matmul_affine(x, w, scale, bias, act="none", tm_max=MATMUL_ROW_TILE):
    M, K = x.shape
    _, Np = w.shape
    TM = _row_tile(M, tm_max)
    kern = functools.partial(_matmul_affine_kernel, act=act)
    return pl.pallas_call(
        kern,
        out_shape=jax.ShapeDtypeStruct((M, Np), jnp.float32),
        grid=(pl.cdiv(M, TM),),
        in_specs=[
            pl.BlockSpec((TM, K), lambda i: (i, 0)),
            pl.BlockSpec((K, Np), lambda i: (0, 0)),
            pl.BlockSpec((1, Np), lambda i: (0, 0)),
            pl.BlockSpec((1, Np), lambda i: (0, 0)),
        ],
        out_specs=pl.BlockSpec((TM, Np), lambda i: (i, 0)),
        compiler_params=_cparams(("parallel",)),
    )(x, w, scale, bias)


def _dw_kernel(p_ref, w_ref, s_ref, b_ref, o_ref, *, act, taps):
    # Depthwise conv: tap-weighted sum (VPU), fused BN affine + SiLU.
    acc = p_ref[0] * w_ref[0]
    for t in range(1, taps):            # static unroll (taps = 9 or 25)
        acc = acc + p_ref[t] * w_ref[t]
    o_ref[...] = _apply_act(acc * s_ref[...] + b_ref[...], act)


def depthwise_bn_act(p, w, scale, bias, act="silu"):
    T, M, C = p.shape
    TM = _dw_row_tile(M, T, C)
    kern = functools.partial(_dw_kernel, act=act, taps=T)
    return pl.pallas_call(
        kern,
        out_shape=jax.ShapeDtypeStruct((M, C), jnp.float32),
        grid=(pl.cdiv(M, TM),),
        in_specs=[
            pl.BlockSpec((T, TM, C), lambda i: (0, i, 0)),
            pl.BlockSpec((T, C), lambda i: (0, 0)),
            pl.BlockSpec((1, C), lambda i: (0, 0)),
            pl.BlockSpec((1, C), lambda i: (0, 0)),
        ],
        out_specs=pl.BlockSpec((TM, C), lambda i: (i, 0)),
        compiler_params=_cparams(("parallel",)),
    )(p, w, scale, bias)


def _se_kernel(h_ref, w1_ref, b1_ref, w2_ref, b2_ref, o_ref, acc_ref, *, inv_hw):
    # Fused SE: global-avg-pool (tiled over HW) + FC1(SiLU) + FC2(sigmoid).
    @pl.when(pl.program_id(0) == 0)
    def _():
        acc_ref[...] = jnp.zeros_like(acc_ref)

    acc_ref[...] += jnp.sum(h_ref[...], axis=1)

    @pl.when(pl.program_id(0) == pl.num_programs(0) - 1)
    def _():
        pooled = acc_ref[...] * inv_hw
        s1 = jnp.dot(pooled.astype(jnp.bfloat16), w1_ref[...],
                     preferred_element_type=jnp.float32) + b1_ref[...]
        s1 = s1 * jax.nn.sigmoid(s1)
        s2 = jnp.dot(s1.astype(jnp.bfloat16), w2_ref[...],
                     preferred_element_type=jnp.float32) + b2_ref[...]
        o_ref[...] = jax.nn.sigmoid(s2)


def se_gate(h, w1, b1, w2, b2, thw_max=256):
    N, HW, C = h.shape
    Csq = w1.shape[1]
    THW = _reduce_tile(HW, thw_max)
    kern = functools.partial(_se_kernel, inv_hw=1.0 / HW)
    return pl.pallas_call(
        kern,
        out_shape=jax.ShapeDtypeStruct((N, C), jnp.float32),
        grid=(HW // THW,),
        in_specs=[
            pl.BlockSpec((N, THW, C), lambda i: (0, i, 0)),
            pl.BlockSpec((C, Csq), lambda i: (0, 0)),
            pl.BlockSpec((1, Csq), lambda i: (0, 0)),
            pl.BlockSpec((Csq, C), lambda i: (0, 0)),
            pl.BlockSpec((1, C), lambda i: (0, 0)),
        ],
        out_specs=pl.BlockSpec((N, C), lambda i: (0, 0)),
        scratch_shapes=[pltpu.VMEM((N, C), jnp.float32)],
        compiler_params=_cparams(("arbitrary",)),
    )(h, w1, b1, w2, b2)


def _proj_kernel(h_ref, g_ref, w_ref, s_ref, b_ref, o_ref):
    # (gate * h) @ W, fused BN affine.  Blocks: h (1,THW,Cexp), gate (1,1,Cexp).
    x = (h_ref[...] * g_ref[...]).astype(jnp.bfloat16)
    x = x.reshape(x.shape[1], x.shape[2])
    acc = jnp.dot(x, w_ref[...], preferred_element_type=jnp.float32)
    y = acc * s_ref[...] + b_ref[...]
    o_ref[...] = y.reshape(o_ref.shape)


def _proj_res_kernel(h_ref, g_ref, w_ref, s_ref, b_ref, r_ref, o_ref):
    x = (h_ref[...] * g_ref[...]).astype(jnp.bfloat16)
    x = x.reshape(x.shape[1], x.shape[2])
    acc = jnp.dot(x, w_ref[...], preferred_element_type=jnp.float32)
    y = acc * s_ref[...] + b_ref[...]
    r = r_ref[...].reshape(y.shape)
    o_ref[...] = (y + r).reshape(o_ref.shape)


def proj_fused(h, gate, w, scale, bias, residual=None, thw_max=MATMUL_ROW_TILE):
    N, HW, Cexp = h.shape
    Cout = w.shape[1]
    THW = _row_tile(HW, thw_max)
    in_specs = [
        pl.BlockSpec((1, THW, Cexp), lambda n, t: (n, t, 0)),
        pl.BlockSpec((1, 1, Cexp), lambda n, t: (n, 0, 0)),
        pl.BlockSpec((Cexp, Cout), lambda n, t: (0, 0)),
        pl.BlockSpec((1, Cout), lambda n, t: (0, 0)),
        pl.BlockSpec((1, Cout), lambda n, t: (0, 0)),
    ]
    args = [h, gate.reshape(N, 1, Cexp), w, scale, bias]
    kern = _proj_kernel
    if residual is not None:
        in_specs.append(pl.BlockSpec((1, THW, Cout), lambda n, t: (n, t, 0)))
        args.append(residual)
        kern = _proj_res_kernel
    return pl.pallas_call(
        kern,
        out_shape=jax.ShapeDtypeStruct((N, HW, Cout), jnp.float32),
        grid=(N, pl.cdiv(HW, THW)),
        in_specs=in_specs,
        out_specs=pl.BlockSpec((1, THW, Cout), lambda n, t: (n, t, 0)),
        compiler_params=_cparams(("parallel", "parallel")),
    )(*args)


def _pool_kernel(x_ref, o_ref, acc_ref, *, inv_hw):
    @pl.when(pl.program_id(0) == 0)
    def _():
        acc_ref[...] = jnp.zeros_like(acc_ref)

    acc_ref[...] += jnp.sum(x_ref[...], axis=1)

    @pl.when(pl.program_id(0) == pl.num_programs(0) - 1)
    def _():
        o_ref[...] = acc_ref[...] * inv_hw


def global_avg_pool(x, thw_max=256):
    N, HW, C = x.shape
    THW = _reduce_tile(HW, thw_max)
    kern = functools.partial(_pool_kernel, inv_hw=1.0 / HW)
    return pl.pallas_call(
        kern,
        out_shape=jax.ShapeDtypeStruct((N, C), jnp.float32),
        grid=(HW // THW,),
        in_specs=[pl.BlockSpec((N, THW, C), lambda i: (0, i, 0))],
        out_specs=pl.BlockSpec((N, C), lambda i: (0, 0)),
        scratch_shapes=[pltpu.VMEM((N, C), jnp.float32)],
        compiler_params=_cparams(("arbitrary",)),
    )(x)


# ----------------------------------------------------------------------------
# JAX glue: layout-only patch extraction
# ----------------------------------------------------------------------------
def im2col(x, k, stride, pad):
    # x: [N, H, W, C] -> [N*Ho*Wo, K*K*C], taps concatenated on the lane axis
    # (no separate HBM transpose).
    N, H, W, C = x.shape
    xp = jnp.pad(x, ((0, 0), (pad, pad), (pad, pad), (0, 0)))
    Ho = (H + 2 * pad - k) // stride + 1
    Wo = (W + 2 * pad - k) // stride + 1
    cols = []
    for dy in range(k):
        for dx in range(k):
            cols.append(xp[:, dy:dy + stride * (Ho - 1) + 1:stride,
                           dx:dx + stride * (Wo - 1) + 1:stride, :])
    xcol = jnp.concatenate(cols, axis=-1).reshape(N * Ho * Wo, k * k * C)
    return xcol, Ho, Wo


def dw_patches(x, k, stride):
    # TODO(synk): taps are still materialized in HBM (K*K copies); a halo-window
    # index_map that DMAs shifted tiles directly from the padded activation
    # would remove this traffic entirely.
    N, H, W, C = x.shape
    pad = (k - 1) // 2
    xp = jnp.pad(x, ((0, 0), (pad, pad), (pad, pad), (0, 0)))
    Ho = (H + 2 * pad - k) // stride + 1
    Wo = (W + 2 * pad - k) // stride + 1
    taps = []
    for dy in range(k):
        for dx in range(k):
            taps.append(
                xp[:, dy:dy + stride * (Ho - 1) + 1:stride,
                   dx:dx + stride * (Wo - 1) + 1:stride, :].reshape(N * Ho * Wo, C))
    return jnp.stack(taps, axis=0), Ho, Wo            # [T, M, C]


# ----------------------------------------------------------------------------
# Deterministic parameter construction (EfficientNet-B0, channels padded to 128)
# ----------------------------------------------------------------------------
# (expand_ratio, kernel, stride, c_in, c_out, num_layers) -- torchvision B0
MBCONV_CFG = [
    (1, 3, 1, 32, 16, 1),
    (6, 3, 2, 16, 24, 2),
    (6, 5, 2, 24, 40, 2),
    (6, 3, 2, 40, 80, 3),
    (6, 5, 1, 80, 112, 3),
    (6, 5, 2, 112, 192, 4),
    (6, 3, 1, 192, 320, 1),
]
BN_EPS = 1e-3


def _pad_last(a, target):
    if a.shape[-1] == target:
        return a
    cfg = [(0, 0)] * a.ndim
    cfg[-1] = (0, target - a.shape[-1])
    return jnp.pad(a, cfg)


def _pad_first(a, target):
    if a.shape[0] == target:
        return a
    cfg = [(0, 0)] * a.ndim
    cfg[0] = (0, target - a.shape[0])
    return jnp.pad(a, cfg)


class ParamGen:
    def __init__(self, seed=0):
        self.key = jax.random.PRNGKey(seed)

    def _next(self):
        self.key, sub = jax.random.split(self.key)
        return sub

    def conv(self, k, cin, cout):
        fan_in = k * k * cin
        return jax.random.normal(self._next(), (k, k, cin, cout), jnp.float32) * (2.0 / fan_in) ** 0.5

    def dwconv(self, k, c):
        return jax.random.normal(self._next(), (k, k, c), jnp.float32) * (2.0 / (k * k)) ** 0.5

    def dense(self, cin, cout):
        return jax.random.normal(self._next(), (cin, cout), jnp.float32) * (2.0 / cin) ** 0.5

    def bias(self, c):
        return 0.01 * jax.random.normal(self._next(), (c,), jnp.float32)

    def bn(self, c):
        # Folded eval-mode BatchNorm: scale = gamma/sqrt(var+eps), bias = beta - mean*scale
        gamma = 1.0 + 0.1 * jax.random.normal(self._next(), (c,), jnp.float32)
        beta = 0.1 * jax.random.normal(self._next(), (c,), jnp.float32)
        mean = 0.1 * jax.random.normal(self._next(), (c,), jnp.float32)
        var = jnp.abs(1.0 + 0.1 * jax.random.normal(self._next(), (c,), jnp.float32))
        scale = gamma / jnp.sqrt(var + BN_EPS)
        bias = beta - mean * scale
        return scale, bias


def build_params(seed=0):
    pg = ParamGen(seed)
    params = {}

    # Stem: 3x3 s2 conv, 3 -> 32 (output padded to 128 lanes)
    c_stem_p = _pad128(32)
    w = pg.conv(3, 3, 32).reshape(27, 32)
    s, b = pg.bn(32)
    params["stem_w"] = _pad_last(w, c_stem_p).astype(jnp.bfloat16)
    params["stem_s"] = _pad_last(s.reshape(1, -1), c_stem_p)
    params["stem_b"] = _pad_last(b.reshape(1, -1), c_stem_p)

    blocks = []
    for (exp, k, st, cin, cout, layers) in MBCONV_CFG:
        for li in range(layers):
            c_in = cin if li == 0 else cout
            stride = st if li == 0 else 1
            cexp = c_in * exp
            csq = max(1, c_in // 4)
            cin_p, cexp_p, csq_p, cout_p = (_pad128(c_in), _pad128(cexp),
                                            _pad128(csq), _pad128(cout))
            blk = {"k": k, "stride": stride, "cin": c_in, "cout": cout}
            if cexp != c_in:
                w = pg.dense(c_in, cexp)
                s, b = pg.bn(cexp)
                blk["expand_w"] = _pad_last(_pad_first(w, cin_p), cexp_p).astype(jnp.bfloat16)
                blk["expand_s"] = _pad_last(s.reshape(1, -1), cexp_p)
                blk["expand_b"] = _pad_last(b.reshape(1, -1), cexp_p)
            wd = pg.dwconv(k, cexp).reshape(k * k, cexp)
            s, b = pg.bn(cexp)
            blk["dw_w"] = _pad_last(wd, cexp_p)
            blk["dw_s"] = _pad_last(s.reshape(1, -1), cexp_p)
            blk["dw_b"] = _pad_last(b.reshape(1, -1), cexp_p)
            w1 = pg.dense(cexp, csq)
            b1 = pg.bias(csq)
            w2 = pg.dense(csq, cexp)
            b2 = pg.bias(cexp)
            blk["se_w1"] = _pad_last(_pad_first(w1, cexp_p), csq_p).astype(jnp.bfloat16)
            blk["se_b1"] = _pad_last(b1.reshape(1, -1), csq_p)
            blk["se_w2"] = _pad_last(_pad_first(w2, csq_p), cexp_p).astype(jnp.bfloat16)
            blk["se_b2"] = _pad_last(b2.reshape(1, -1), cexp_p)
            wp = pg.dense(cexp, cout)
            s, b = pg.bn(cout)
            blk["proj_w"] = _pad_last(_pad_first(wp, cexp_p), cout_p).astype(jnp.bfloat16)
            blk["proj_s"] = _pad_last(s.reshape(1, -1), cout_p)
            blk["proj_b"] = _pad_last(b.reshape(1, -1), cout_p)
            blocks.append(blk)
    params["blocks"] = blocks

    wh = pg.dense(320, 1280)
    s, b = pg.bn(1280)
    params["head_w"] = _pad_first(wh, _pad128(320)).astype(jnp.bfloat16)
    params["head_s"] = s.reshape(1, -1)
    params["head_b"] = b.reshape(1, -1)
    return params


# ----------------------------------------------------------------------------
# Forward pass (== FeatureExtractor.forward: features + avgpool + flatten)
# ----------------------------------------------------------------------------
def feature_extractor_forward(params, x_nchw):
    N = x_nchw.shape[0]
    x = jnp.transpose(x_nchw, (0, 2, 3, 1)).astype(jnp.float32)   # NCHW -> NHWC

    # Stem: 3x3 s2 conv + BN + SiLU (im2col + tiled fused matmul)
    xcol, H, W = im2col(x, 3, 2, 1)
    x = matmul_affine(xcol, params["stem_w"], params["stem_s"], params["stem_b"],
                      act="silu")
    x = x.reshape(N, H * W, -1)

    for blk in params["blocks"]:
        inp = x
        h = x
        if "expand_w" in blk:
            Nn, HW, Cc = h.shape
            h = matmul_affine(h.reshape(Nn * HW, Cc), blk["expand_w"],
                              blk["expand_s"], blk["expand_b"], act="silu")
            h = h.reshape(Nn, HW, -1)
        # Depthwise KxK conv + BN + SiLU (taps in glue, tiled tap-sum in Pallas)
        Ce = h.shape[-1]
        p, Ho, Wo = dw_patches(h.reshape(N, H, W, Ce), blk["k"], blk["stride"])
        h = depthwise_bn_act(p, blk["dw_w"], blk["dw_s"], blk["dw_b"], act="silu")
        h = h.reshape(N, Ho * Wo, Ce)
        # Squeeze-Excitation gate (pool + FC1 SiLU + FC2 sigmoid, one kernel)
        gate = se_gate(h, blk["se_w1"], blk["se_b1"], blk["se_w2"], blk["se_b2"])
        # gate*h -> 1x1 projection + BN (+ residual), fused in one kernel
        res = inp if (blk["stride"] == 1 and blk["cin"] == blk["cout"]) else None
        h = proj_fused(h, gate, blk["proj_w"], blk["proj_s"], blk["proj_b"], res)
        x, H, W = h, Ho, Wo

    # Head: 1x1 conv 320->1280 + BN + SiLU, then global avg pool + flatten
    Nn, HW, Cc = x.shape
    x = matmul_affine(x.reshape(Nn * HW, Cc), params["head_w"],
                      params["head_s"], params["head_b"], act="silu")
    x = x.reshape(N, HW, -1)
    pooled = global_avg_pool(x)                                   # [N, 1280]
    return pooled.reshape(N, -1)                                  # x.view(N, -1)


# TODO(synk): pretrained torchvision ImageNet weights cannot be loaded here;
# parameters are deterministic random stand-ins with identical (padded) shapes.

if __name__ == "__main__":
    key = jax.random.PRNGKey(0)
    x = jax.random.normal(key, (2, 3, 32, 32), jnp.float32)   # NCHW like PyTorch
    params = build_params(seed=0)
    out = feature_extractor_forward(params, x)
    out = jax.block_until_ready(out)
    assert out.shape == (2, 1280), out.shape
    print("KERNEL_OK")
</pallas_src>

<mosaic_0001>
module attributes {stable_mosaic.version = 11 : i64} {
  func.func @_matmul_affine_kernel(%arg0: i32, %arg1: memref<256x27xf32, #tpu.memory_space<vmem>>, %arg2: memref<27x128xbf16, #tpu.memory_space<vmem>>, %arg3: memref<1x128xf32, #tpu.memory_space<vmem>>, %arg4: memref<1x128xf32, #tpu.memory_space<vmem>>, %arg5: memref<256x128xf32, #tpu.memory_space<vmem>>) attributes {dimension_semantics = [#tpu.dimension_semantics<parallel>], iteration_bounds = array<i64: 2>, scalar_prefetch = 0 : i64, scratch_operands = 0 : i64, tpu.core_type = #tpu.core_type<tc>, window_params = [{transform_indices = @transform_0, window_bounds = array<i64: 256, 27>}, {pipeline_mode = #tpu.pipeline_mode<synchronous>, transform_indices = @transform_1, window_bounds = array<i64: 27, 128>}, {pipeline_mode = #tpu.pipeline_mode<synchronous>, transform_indices = @transform_2, window_bounds = array<i64: 1, 128>}, {pipeline_mode = #tpu.pipeline_mode<synchronous>, transform_indices = @transform_3, window_bounds = array<i64: 1, 128>}, {transform_indices = @transform_4, window_bounds = array<i64: 256, 128>}]} {
    %c0 = arith.constant 0 : index
    %c0_0 = arith.constant 0 : index
    %0 = vector.load %arg1[%c0, %c0_0] : memref<256x27xf32, #tpu.memory_space<vmem>>, vector<256x27xf32>
    %1 = arith.truncf %0 : vector<256x27xf32> to vector<256x27xbf16>
    %c0_1 = arith.constant 0 : index
    %c0_2 = arith.constant 0 : index
    %2 = vector.load %arg2[%c0_1, %c0_2] : memref<27x128xbf16, #tpu.memory_space<vmem>>, vector<27x128xbf16>
    %cst = arith.constant dense<0.000000e+00> : vector<256x128xf32>
    %3 = tpu.matmul %1, %2, %cst {dimension_numbers = #tpu.dot_dimension_numbers<[1], [0], [0], [1], [0, 0, 1, 1], [], []>} : vector<256x27xbf16>, vector<27x128xbf16>, vector<256x128xf32> -> vector<256x128xf32>
    %c0_3 = arith.constant 0 : index
    %c0_4 = arith.constant 0 : index
    %4 = vector.load %arg3[%c0_3, %c0_4] : memref<1x128xf32, #tpu.memory_space<vmem>>, vector<1x128xf32>
    %5 = vector.broadcast %4 : vector<1x128xf32> to vector<256x128xf32>
    %6 = arith.mulf %3, %5 : vector<256x128xf32>
    %c0_5 = arith.constant 0 : index
    %c0_6 = arith.constant 0 : index
    %7 = vector.load %arg4[%c0_5, %c0_6] : memref<1x128xf32, #tpu.memory_space<vmem>>, vector<1x128xf32>
    %8 = vector.broadcast %7 : vector<1x128xf32> to vector<256x128xf32>
    %9 = arith.addf %6, %8 : vector<256x128xf32>
    %10 = arith.negf %9 : vector<256x128xf32>
    %11 = math.exp %10 : vector<256x128xf32>
    %cst_7 = arith.constant 1.000000e+00 : f32
    %12 = vector.broadcast %cst_7 : f32 to vector<256x128xf32>
    %13 = arith.addf %12, %11 : vector<256x128xf32>
    %14 = arith.divf %12, %13 : vector<256x128xf32>
    %15 = arith.mulf %9, %14 : vector<256x128xf32>
    %c0_8 = arith.constant 0 : index
    %c0_9 = arith.constant 0 : index
    %16 = vector.load %arg5[%c0_8, %c0_9] : memref<256x128xf32, #tpu.memory_space<vmem>>, vector<256x128xf32>
    tpu.vector_store %arg5[%c0_8, %c0_9], %15 {strides = array<i32>} : memref<256x128xf32, #tpu.memory_space<vmem>>, vector<256x128xf32>,
    return
  }
  func.func @transform_0(%arg0: i32) -> (i32, i32) {
    %c0_i32 = arith.constant 0 : i32
    %c0_i32_0 = arith.constant 0 : i32
    return %arg0, %c0_i32 : i32, i32
  }
  func.func @transform_1(%arg0: i32) -> (i32, i32) {
    %c0_i32 = arith.constant 0 : i32
    %c0_i32_0 = arith.constant 0 : i32
    %c0_i32_1 = arith.constant 0 : i32
    return %c0_i32, %c0_i32_0 : i32, i32
  }
  func.func @transform_2(%arg0: i32) -> (i32, i32) {
    %c0_i32 = arith.constant 0 : i32
    %c0_i32_0 = arith.constant 0 : i32
    %c0_i32_1 = arith.constant 0 : i32
    return %c0_i32, %c0_i32_0 : i32, i32
  }
  func.func @transform_3(%arg0: i32) -> (i32, i32) {
    %c0_i32 = arith.constant 0 : i32
    %c0_i32_0 = arith.constant 0 : i32
    %c0_i32_1 = arith.constant 0 : i32
    return %c0_i32, %c0_i32_0 : i32, i32
  }
  func.func @transform_4(%arg0: i32) -> (i32, i32) {
    %c0_i32 = arith.constant 0 : i32
    %c0_i32_0 = arith.constant 0 : i32
    return %arg0, %c0_i32 : i32, i32
  }
}

</mosaic_0001>

<bundles_post_ra>
// kernel: tpu_custom_call.1
= control target key start
LH: loop header
LB: loop body
LE: loop exit
PB: predicated region body
PF: predicated region fallthrough
CT: control target
= control target key end

     0   :  { %9 = vsyncpa [#allocation3], 0  ;;  %s1698_s0 = inlined_call_operand.vmem [shape: f32[512,27], index: 0, kind: input, shape index: {}]   ;;  %s1699_s1 = inlined_call_operand.vmem [shape: bf16[27,128], index: 1, kind: input, shape index: {}]   ;;  %s1700_s2 = inlined_call_operand.vmem [shape: f32[1,128], index: 2, kind: input, shape index: {}]   ;;  %s1701_s3 = inlined_call_operand.vmem [shape: f32[1,128], index: 3, kind: input, shape index: {}]   ;;  %s1702_s4 = inlined_call_operand.hbm [shape: f32[512,128], index: 4, kind: output, shape index: {}]  }
   0x1   :  { %11 = vsyncpa [#allocation3 + $0x1], 0  ;;  %s1278_s15 = smov 0   ;;  %s1280_s16 = smov 0  }
   0x2   :  { %s1282_s17 = smov 0   ;;  %s1284_s18 = smov 0  }
   0x3 LB: > { %s1299_s19 = sadd.s32 4294967295, %s1247_s18   ;;  %s890_s20 = sadd.s32 4294967294, %s1247_s18   ;;  %s1247_s18 = sphi %s1284_s18, %s1708_s18   ;;  %s1243_s17 = sphi %s1282_s17, %s1707_s17   ;;  %s1239_s16 = sphi %s1280_s16, %s1706_s16   ;;  %s1235_s15 = sphi %s1278_s15, %s1705_s15  }
   0x4   : > { %s1303_s21 = sadd.s32 1, %s1247_s18   ;;  %s113_s22 = sadd.s32 1, %s1243_s17 }
   0x5   : > { %s110_s23 = ssub.s32 %s1247_s18, %s1303_s21  ;;  %p123_p0 = scmp.ne.s32.totalorder %s1243_s17, %s1239_s16 }
   0x6   : > { %p111_p1 = scmp.eq.s32.totalorder %s110_s23, 0  ;;  %p124_p2 = scmp.eq.s32.totalorder %s1299_s19, 1 }
   0x7   : > { %p129_p3 = scmp.ne.s32.totalorder %s1239_s16, %s1235_s15  ;;  %p130_p4 = scmp.eq.s32.totalorder %s890_s20, 1 }
   0x8   : > { %s1314_s24 = scalar_select %p111_p1, %s1243_s17, %s113_s22  }
   0x9   : > { %p1316_p5 = por %p124_p2, %p123_p0  ;;  %p1320_p6 = por %p130_p4, %p129_p3 }
   0xa   : > { %p893_p7 = scmp.ge.s32.totalorder %s1247_s18, 1  ;;  %p166_p8 = scmp.lt.s32.totalorder %s1247_s18, 3 }
   0xc   : > { %p167_p9 = pnand %p893_p7, %p166_p8 }
   0xd   : > { %v1055_v0 = vld [vmem:[%s1699_s1] sm:$0xff] (!%p167_p9)   ;;  %vm312_vm0 = vcmask (!%p167_p9), 1044480   ;;  %v1056_v1 = vld [vmem:[%s1699_s1 + $0x8] sm:$0x3f] (!%p167_p9)   ;;  %vm313_vm1 = vcmask (!%p167_p9), 1045504   ;;  %s895_s5 = sshll.u32 (!%p167_p9), %s1299_s19, 5 }
   0xe   : > { %170 = sbr.rel (%p167_p9) target bundleno = 346 (0x15a), region = 36  ;;  %973 = vmatprep.subr.bf16.mxu0 (!%p167_p9), %v1055_v0  ;;  %1009 = vmatprep.subr.bf16.mxu1 (!%p167_p9), %v1055_v0  ;;  %v1249_v2 = vmov (!%p167_p9), 65535   ;;  %p193_p10 = scmp.lt.s32.totalorder (!%p167_p9), %s895_s5, 63  ;;  %vm263_vm2 = vcmask (!%p167_p9), 220160   ;;  %v1389_v54 = vld [vmem:[%s1700_s2] ss:$0 sm:$0xff] (!%p167_p9) }
   0xf   : > { %974 = vmatpush3.bf16.msra.mxu0 (!%p167_p9), %v1055_v0  ;;  %1011 = vmatpush3.bf16.msra.mxu1 (!%p167_p9), %v1055_v0  ;;  %v314_v3 = vsel (!%p167_p9), %vm312_vm0, 4294967295, %v1249_v2  ;;  %v1394_v56 = vld [vmem:[%s1701_s3] ss:$0 sm:$0xff] (!%p167_p9)  ;;  %s189_s14 = sand.u32 (!%p167_p9), 1, %s1239_s16   ;;  %s954_s23 = sshll.u32 (!%p167_p9), %s1299_s19, 12 }
  0x10   : > { %v315_v4 = vsel (!%p167_p9), %vm313_vm1, %v314_v3, 0  ;;  %s1493_s20 = sshll.u32 (!%p167_p9), %s189_s14, 8  ;;  %s1647_s19 = scalar_lea.hbm (!%p167_p9), %s1702_s4, %s954_s23 }
  0x11   : > { %v317_v5 = vand.u32 (!%p167_p9), %v1056_v1, %v315_v4  ;;  %s1522_s22 = scalar_lea.vmem (!%p167_p9), [#allocation2], %s1493_s20  ;;  %s1657_s30 = scalar_lea.sflag (!%p167_p9), [#allocation3], %s189_s14 }
  0x12   : > { %s828_s27 = sshll.u32 (!%p167_p9), %s1522_s22, 4  ;;  %s1649_s27 = int_to_ptr.vmem [resolvable:$true] %s828_s27 }
  0x13   : > { %975 = vmatprep.subr.bf16.mxu0 (!%p167_p9), %v317_v5  ;;  %1010 = vmatprep.subr.bf16.mxu1 (!%p167_p9), %v317_v5 }
  0x14   : > { %976 = vmatpush3.bf16.msra.mxu0 (!%p167_p9), %v317_v5  ;;  %1012 = vmatpush3.bf16.msra.mxu1 (!%p167_p9), %v317_v5 }
  0x15   : > { %s1710_s5 = smov (!%p193_p10, %s895_s5), 63 }
  0x16   : > { %s896_s6 = sshll.u32 %s1710_s5, 3  ;;  %s1185_s5 = scalar_lea.vmem %s1649_s27, 4096 }
  0x17   : > { %s1336_s9 = scalar_lea.vmem %s1698_s0, %s896_s6  ;;  %p1186_p11 = scmp.ne.s32.totalorder %s1649_s27, %s1185_s5 }
  0x18   : > { %v200_v6 = vld [vmem:[%s1336_s9] sm:$0xff]  ;;  %v201_v7 = vld [vmem:[%s1336_s9 + $0x8] sm:$0xff]  ;;  %v202_v11 = vld [vmem:[%s1336_s9 + $0x10] sm:$0xff]  ;;  %s1250_s6 = smov [#allocation2]  }
  0x19   : > { %v216_v8 = vld [vmem:[%s1336_s9 + $0x80] sm:$0xff]  ;;  %v232_v9 = vpack.c.bf16 %v201_v7, %v200_v6  ;;  %v217_v10 = vld [vmem:[%s1336_s9 + $0x88] sm:$0xff]  ;;  %v203_v12 = vld [vmem:[%s1336_s9 + $0x18] sm:$0xff]  ;;  %p1187_p12 = pnand %p1186_p11, %p1316_p5  ;;  %s1189_s7 = sshll.u32 %s1250_s6, 4  ;;  %s1190_s7 = int_to_ptr.vmem [resolvable:$false] %s1189_s7 }
  0x1a   : > { %v240_v13 = vpack.c.bf16 %v217_v10, %v216_v8  ;;  %v233_v14 = vpack.c.bf16 %v203_v12, %v202_v11  ;;  %v218_v15 = vld [vmem:[%s1336_s9 + $0x90] sm:$0xff]  ;;  %v219_v16 = vld [vmem:[%s1336_s9 + $0x98] sm:$0xff]  ;;  %v204_v17 = vld [vmem:[%s1336_s9 + $0x20] sm:$0xff]  ;;  %s1191_s8 = scalar_lea.vmem %s1190_s7, 8192  ;;  %p1192_p0 = scmp.lt.s32.totalorder %s1649_s27, %s1190_s7 }
  0x1b   : > { %977 = vmatprep.mubr.msk.bf16.mxu0 %vm263_vm2, %v232_v9  ;;  %v241_v18 = vpack.c.bf16 %v219_v16, %v218_v15  ;;  %v205_v19 = vld [vmem:[%s1336_s9 + $0x28] sm:$0xff]  ;;  %v220_v20 = vld [vmem:[%s1336_s9 + $0xa0] sm:$0xff]  ;;  %v206_v24 = vld [vmem:[%s1336_s9 + $0x30] sm:$0xff]  ;;  %p1188_p13 = pneg %p1187_p12  ;;  %p1193_p1 = scmp.lt.s32.totalorder %s1191_s8, %s1185_s5 }
  0x1c   : > { %v221_v21 = vld [vmem:[%s1336_s9 + $0xa8] sm:$0xff]  ;;  %993 = vmatprep.mubr.msk.bf16.mxu1 %vm263_vm2, %v240_v13  ;;  %978 = vmatmul.mubr.msk.bf16.vlgmr.msra.gmra.mrb[0].mxu0 %vm263_vm2, %v233_v14  ;;  %v234_v22 = vpack.c.bf16 %v205_v19, %v204_v17  ;;  %v207_v25 = vld [vmem:[%s1336_s9 + $0x38] sm:$0xff]  ;;  %v222_v26 = vld [vmem:[%s1336_s9 + $0xb0] sm:$0xff] }
  0x1d   : > { %v242_v23 = vpack.c.bf16 %v221_v21, %v220_v20  ;;  %994 = vmatmul.mubr.msk.bf16.vlgmr.msra.gmra.mrb[0].mxu1 %vm263_vm2, %v241_v18  ;;  %v223_v27 = vld [vmem:[%s1336_s9 + $0xb8] sm:$0xff]  ;;  %v208_v28 = vld [vmem:[%s1336_s9 + $0x40] sm:$0xff]  ;;  %v209_v29 = vld [vmem:[%s1336_s9 + $0x48] sm:$0xff]  ;;  %v235_v32 = vpack.c.bf16 %v207_v25, %v206_v24  ;;  %p1194_p2 = por %p1193_p1, %p1192_p0 }
  0x1e   : > { %981 = vmatprep.mubr.msk.bf16.mxu0 %vm263_vm2, %v234_v22  ;;  %v224_v30 = vld [vmem:[%s1336_s9 + $0xc0] sm:$0xff]  ;;  %v225_v31 = vld [vmem:[%s1336_s9 + $0xc8] sm:$0xff]  ;;  %v243_v33 = vpack.c.bf16 %v223_v27, %v222_v26  ;;  %v236_v34 = vpack.c.bf16 %v209_v29, %v208_v28  ;;  %v210_v36 = vld [vmem:[%s1336_s9 + $0x50] sm:$0xff] }
  0x1f   : > { %997 = vmatprep.mubr.msk.bf16.mxu1 %vm263_vm2, %v242_v23  ;;  %v244_v35 = vpack.c.bf16 %v225_v31, %v224_v30  ;;  %v211_v37 = vld [vmem:[%s1336_s9 + $0x58] sm:$0xff]  ;;  %v226_v38 = vld [vmem:[%s1336_s9 + $0xd0] sm:$0xff]  ;;  %v212_v40 = vld [vmem:[%s1336_s9 + $0x60] sm:$0xff]  ;;  %p1195_p3 = pnand %p1194_p2, %p1188_p13 }
  0x20   : > { %v227_v39 = vld [vmem:[%s1336_s9 + $0xd8] sm:$0xff]  ;;  %v213_v41 = vld [vmem:[%s1336_s9 + $0x68] sm:$0xff]  ;;  %v228_v42 = vld [vmem:[%s1336_s9 + $0xe0] sm:$0xff]  ;;  %v237_v44 = vpack.c.bf16 %v211_v37, %v210_v36 }
  0x21   : > { %v229_v43 = vld [vmem:[%s1336_s9 + $0xe8] sm:$0xff]  ;;  %v245_v45 = vpack.c.bf16 %v227_v39, %v226_v38  ;;  %v238_v46 = vpack.c.bf16 %v213_v41, %v212_v40  ;;  %v214_v48 = vld [vmem:[%s1336_s9 + $0x70] sm:$0xff]  ;;  %v215_v49 = vld [vmem:[%s1336_s9 + $0x78] sm:$0xff] }
  0x22   : > { %v246_v47 = vpack.c.bf16 %v229_v43, %v228_v42  ;;  %v230_v50 = vld [vmem:[%s1336_s9 + $0xf0] sm:$0xff]  ;;  %v231_v51 = vld [vmem:[%s1336_s9 + $0xf8] sm:$0xff]  ;;  %v239_v52 = vpack.c.bf16 %v215_v49, %v214_v48 }
  0x23   : > { %v247_v53 = vpack.c.bf16 %v231_v51, %v230_v50 }
  0x24   : > { %982 = vmatmul.mubr.msk.bf16.gmra.mrb[4].mxu0 %vm263_vm2, %v235_v32 }
  0x25   : > { %998 = vmatmul.mubr.msk.bf16.gmra.mrb[4].mxu1 %vm263_vm2, %v243_v33  ;;  %985 = vmatprep.mubr.msk.bf16.mxu0 %vm263_vm2, %v236_v34 }
  0x26   : > { %1001 = vmatprep.mubr.msk.bf16.mxu1 %vm263_vm2, %v244_v35 }
  0x2c   : > { %986 = vmatmul.mubr.msk.bf16.gmra.mrb[8].mxu0 %vm263_vm2, %v237_v44 }
  0x2d   : > { %1002 = vmatmul.mubr.msk.bf16.gmra.mrb[8].mxu1 %vm263_vm2, %v245_v45  ;;  %989 = vmatprep.mubr.msk.bf16.mxu0 %vm263_vm2, %v238_v46 }
  0x2e   : > { %1005 = vmatprep.mubr.msk.bf16.mxu1 %vm263_vm2, %v246_v47 }
  0x34   : > { %990 = vmatmul.mubr.msk.bf16.gmra.mrb[12].mxu0 %vm263_vm2, %v239_v52 }
  0x35   : > { %1006 = vmatmul.mubr.msk.bf16.gmra.mrb[12].mxu1 %vm263_vm2, %v247_v53 }
  0xef   : > { %v979_v55 = vpop.f32.mrb[0].mxu0 }
  0xf0   : > { %v489_v57 = vmul.f32 %v979_v55, %v1389_v54  ;;  %v995_v58 = vpop.f32.mrb[0].mxu1  ;;  %v353_v59 = vpop.f32.mrb[1].mxu0 }
  0xf1   : > { %v505_v60 = vmul.f32 %v995_v58, %v1389_v54  ;;  %v487_v61 = vmul.f32 %v1389_v54, %v353_v59  ;;  %v417_v62 = vpop.f32.mrb[1].mxu1  ;;  %v980_v63 = vpop.f32.mrb[2].mxu0 }
  0xf2   : > { %v1400_v0 = vadd.f32 %v1394_v56, %v489_v57  ;;  %v503_v1 = vmul.f32 %v1389_v54, %v417_v62  ;;  %v490_v2 = vmul.f32 %v980_v63, %v1389_v54  ;;  %v996_v3 = vpop.f32.mrb[2].mxu1  ;;  %v356_v4 = vpop.f32.mrb[3].mxu0 }
  0xf3   : > { %v1405_v5 = vadd.f32 %v1394_v56, %v505_v60  ;;  %v1408_v6 = vadd.f32 %v1394_v56, %v487_v61  ;;  %v506_v7 = vmul.f32 %v996_v3, %v1389_v54  ;;  %v488_v8 = vmul.f32 %v1389_v54, %v356_v4  ;;  %v420_v9 = vpop.f32.mrb[3].mxu1 }
  0xf4   : > { %v919_v10 = vmul.f32 -1.442695, %v1400_v0  ;;  %v1414_v11 = vadd.f32 %v1394_v56, %v503_v1  ;;  %v1417_v12 = vadd.f32 %v1394_v56, %v490_v2  ;;  %v504_v13 = vmul.f32 %v1389_v54, %v420_v9 }
  0xf5   : > { %v935_v14 = vmul.f32 -1.442695, %v1405_v5  ;;  %v917_v15 = vmul.f32 -1.442695, %v1408_v6  ;;  %v1423_v16 = vadd.f32 %v1394_v56, %v506_v7  ;;  %v1426_v17 = vadd.f32 %v1394_v56, %v488_v8 }
  0xf6   : > { %1057 = vpow2.f32 %v919_v10  ;;  %v933_v18 = vmul.f32 -1.442695, %v1414_v11  ;;  %v920_v19 = vmul.f32 -1.442695, %v1417_v12  ;;  %v1431_v20 = vadd.f32 %v1394_v56, %v504_v13 }
  0xf7   : > { %1059 = vpow2.f32 %v935_v14  ;;  %v936_v21 = vmul.f32 -1.442695, %v1423_v16  ;;  %v983_v22 = vpop.f32.mrb[4].mxu0  ;;  %v918_v23 = vmul.f32 -1.442695, %v1426_v17 }
  0xf8   : > { %1061 = vpow2.f32 %v917_v15  ;;  %v493_v24 = vmul.f32 %v983_v22, %v1389_v54  ;;  %v999_v25 = vpop.f32.mrb[4].mxu1  ;;  %v369_v26 = vpop.f32.mrb[5].mxu0  ;;  %v934_v27 = vmul.f32 -1.442695, %v1431_v20 }
  0xf9   : > { %1063 = vpow2.f32 %v933_v18  ;;  %v509_v28 = vmul.f32 %v999_v25, %v1389_v54  ;;  %v491_v29 = vmul.f32 %v1389_v54, %v369_v26  ;;  %v433_v30 = vpop.f32.mrb[5].mxu1  ;;  %v984_v31 = vpop.f32.mrb[6].mxu0 }
  0xfa   : > { %1065 = vpow2.f32 %v920_v19  ;;  %v1440_v32 = vadd.f32 %v1394_v56, %v493_v24  ;;  %v507_v33 = vmul.f32 %v1389_v54, %v433_v30  ;;  %v494_v34 = vmul.f32 %v984_v31, %v1389_v54  ;;  %v1000_v35 = vpop.f32.mrb[6].mxu1  ;;  %v372_v36 = vpop.f32.mrb[7].mxu0 }
  0xfb   : > { %1067 = vpow2.f32 %v936_v21  ;;  %v1445_v37 = vadd.f32 %v1394_v56, %v509_v28  ;;  %v1448_v38 = vadd.f32 %v1394_v56, %v491_v29  ;;  %v436_v39 = vpop.f32.mrb[7].mxu1  ;;  %v510_v49 = vmul.f32 %v1000_v35, %v1389_v54 }
  0xfc   : > { %1069 = vpow2.f32 %v918_v23  ;;  %v923_v40 = vmul.f32 -1.442695, %v1440_v32  ;;  %v1452_v41 = vadd.f32 %v1394_v56, %v507_v33  ;;  %v1455_v42 = vadd.f32 %v1394_v56, %v494_v34 }
  0xfd   : > { %1071 = vpow2.f32 %v934_v27  ;;  %v939_v43 = vmul.f32 -1.442695, %v1445_v37  ;;  %v921_v44 = vmul.f32 -1.442695, %v1448_v38  ;;  %v492_v55 = vmul.f32 %v1389_v54, %v372_v36 }
  0xfe   : > { %1073 = vpow2.f32 %v923_v40  ;;  %v937_v45 = vmul.f32 -1.442695, %v1452_v41  ;;  %v924_v46 = vmul.f32 -1.442695, %v1455_v42  ;;  %v508_v61 = vmul.f32 %v1389_v54, %v436_v39 }
  0xff   : > { %1075 = vpow2.f32 %v939_v43  ;;  %v987_v47 = vpop.f32.mrb[8].mxu0  ;;  %v1466_v9 = vadd.f32 %v1394_v56, %v510_v49  ;;  %v1470_v15 = vadd.f32 %v1394_v56, %v492_v55 }
 0x100   : > { %v1058_v48 = vpop.eup %1057  ;;  %1077 = vpow2.f32 %v921_v44  ;;  %v1003_v50 = vpop.f32.mrb[8].mxu1  ;;  %v497_v3 = vmul.f32 %v987_v47, %v1389_v54  ;;  %v1473_v21 = vadd.f32 %v1394_v56, %v508_v61 }
 0x101   : > { %v385_v51 = vpop.f32.mrb[9].mxu0  ;;  %v1060_v52 = vpop.eup %1059  ;;  %v656_v53 = vadd.f32 1.0, %v1058_v48  ;;  %1079 = vpow2.f32 %v937_v45  ;;  %v513_v10 = vmul.f32 %v1003_v50, %v1389_v54  ;;  %v940_v28 = vmul.f32 -1.442695, %v1466_v9 }
 0x102   : > { %v449_v57 = vpop.f32.mrb[9].mxu1  ;;  %v988_v58 = vpop.f32.mrb[10].mxu0  ;;  %v672_v60 = vadd.f32 1.0, %v1060_v52  ;;  %1081 = vpow2.f32 %v924_v46  ;;  %v1477_v24 = vadd.f32 %v1394_v56, %v497_v3  ;;  %v922_v35 = vmul.f32 -1.442695, %v1470_v15 }
 0x103   : > { %v1062_v59 = vpop.eup %1061  ;;  %v1004_v62 = vpop.f32.mrb[10].mxu1  ;;  %1083 = vrcp.f32 %v656_v53  ;;  %v1481_v29 = vadd.f32 %v1394_v56, %v513_v10  ;;  %v495_v36 = vmul.f32 %v1389_v54, %v385_v51  ;;  %v938_v45 = vmul.f32 -1.442695, %v1473_v21 }
 0x104   : > { %v388_v63 = vpop.f32.mrb[11].mxu0  ;;  %v1064_v1 = vpop.eup %1063  ;;  %v654_v2 = vadd.f32 1.0, %v1062_v59  ;;  %1085 = vrcp.f32 %v672_v60  ;;  %v511_v46 = vmul.f32 %v1389_v54, %v449_v57  ;;  %v927_v51 = vmul.f32 -1.442695, %v1477_v24 }
 0x105   : > { %v452_v4 = vpop.f32.mrb[11].mxu1  ;;  %v1066_v7 = vpop.eup %1065  ;;  %v670_v8 = vadd.f32 1.0, %v1064_v1  ;;  %v498_v52 = vmul.f32 %v988_v58, %v1389_v54  ;;  %v943_v60 = vmul.f32 -1.442695, %v1481_v29  ;;  %v514_v57 = vmul.f32 %v1004_v62, %v1389_v54 }
 0x106   : > { %v1068_v13 = vpop.eup %1067  ;;  %1087 = vrcp.f32 %v654_v2  ;;  %v657_v14 = vadd.f32 1.0, %v1066_v7  ;;  %v1508_v2 = vadd.f32 %v1394_v56, %v495_v36  ;;  %v496_v3 = vmul.f32 %v1389_v54, %v388_v63 }
 0x107   : > { %v1070_v18 = vpop.eup %1069  ;;  %1089 = vrcp.f32 %v670_v8  ;;  %v673_v19 = vadd.f32 1.0, %v1068_v13  ;;  %v991_v25 = vpop.f32.mrb[12].mxu0  ;;  %v1513_v8 = vadd.f32 %v1394_v56, %v511_v46  ;;  %v512_v10 = vmul.f32 %v1389_v54, %v452_v4 }
 0x108   : > { %v1072_v22 = vpop.eup %1071  ;;  %1091 = vrcp.f32 %v657_v14  ;;  %v655_v23 = vadd.f32 1.0, %v1070_v18  ;;  %v1007_v30 = vpop.f32.mrb[12].mxu1  ;;  %v1518_v14 = vadd.f32 %v1394_v56, %v498_v52  ;;  %v501_v18 = vmul.f32 %v991_v25, %v1389_v54 }
 0x109   : > { %v1074_v26 = vpop.eup %1073  ;;  %1093 = vrcp.f32 %v673_v19  ;;  %v671_v27 = vadd.f32 1.0, %v1072_v22  ;;  %v1483_v31 = vpop.f32.mrb[13].mxu0  ;;  %v1527_v63 = vadd.f32 %v1394_v56, %v514_v57  ;;  %v1534_v25 = vadd.f32 %v1394_v56, %v496_v3 }
 0x10a   : > { %v1076_v33 = vpop.eup %1075  ;;  %1095 = vrcp.f32 %v655_v23  ;;  %v660_v34 = vadd.f32 1.0, %v1074_v26  ;;  %v1487_v39 = vpop.f32.mrb[13].mxu1  ;;  %v925_v23 = vmul.f32 -1.442695, %v1508_v2 }
 0x10b   : > { %v1489_v40 = vpop.f32.mrb[14].mxu0  ;;  %v1078_v43 = vpop.eup %1077  ;;  %1097 = vrcp.f32 %v671_v27  ;;  %v676_v44 = vadd.f32 1.0, %v1076_v33  ;;  %v941_v27 = vmul.f32 -1.442695, %v1513_v8  ;;  %v928_v33 = vmul.f32 -1.442695, %v1518_v14 }
 0x10c   : > { %v1497_v47 = vpop.f32.mrb[14].mxu1  ;;  %v1499_v48 = vpop.f32.mrb[15].mxu0  ;;  %1099 = vrcp.f32 %v660_v34  ;;  %v658_v50 = vadd.f32 1.0, %v1078_v43  ;;  %v1546_v34 = vadd.f32 %v1394_v56, %v501_v18  ;;  %v944_v36 = vmul.f32 -1.442695, %v1527_v63 }
 0x10d   : > { %v1080_v49 = vpop.eup %1079  ;;  %v1503_v53 = vpop.f32.mrb[15].mxu1  ;;  %1101 = vrcp.f32 %v676_v44  ;;  %v515_v18 = vmul.f32 %v1389_v54, %v1487_v39  ;;  %v500_v39 = vmul.f32 %v1389_v54, %v1499_v48 }
 0x10e   : > { %v1082_v55 = vpop.eup %1081  ;;  %v674_v59 = vadd.f32 1.0, %v1080_v49  ;;  %1103 = vrcp.f32 %v658_v50 }
 0x10f   : > { %v1084_v61 = vpop.eup %1083  ;;  %v661_v1 = vadd.f32 1.0, %v1082_v55 }
 0x110   : > { %v1086_v7 = vpop.eup %1085  ;;  %v752_v58 = vmul.f32 %v1084_v61, %v1400_v0  ;;  %1105 = vrcp.f32 %v674_v59 }
 0x111   : > { %v1088_v13 = vpop.eup %1087  ;;  %v768_v62 = vmul.f32 %v1086_v7, %v1405_v5  ;;  %1107 = vrcp.f32 %v661_v1  ;;  %v517_v5 = vmul.f32 %v1007_v30, %v1389_v54 }
 0x112   : > { %v1090_v19 = vpop.eup %1089  ;;  %784 = vst [vmem:[%s1522_s22 + $0x10] sm:$0xff] %v752_v58  ;;  %v750_v0 = vmul.f32 %v1088_v13, %v1408_v6  ;;  %1109 = vpow2.f32 %v940_v28  ;;  %v1540_v28 = vadd.f32 %v1394_v56, %v512_v10  ;;  %v499_v13 = vmul.f32 %v1389_v54, %v1483_v31 }
 0x113   : > { %v1092_v4 = vpop.eup %1091  ;;  %800 = vst [vmem:[%s1522_s22 + $0x90] sm:$0xff] %v768_v62  ;;  %v766_v22 = vmul.f32 %v1090_v19, %v1414_v11  ;;  %1111 = vpow2.f32 %v922_v35  ;;  %v1552_v43 = vadd.f32 %v1394_v56, %v517_v5  ;;  %v502_v5 = vmul.f32 %v1489_v40, %v1389_v54 }
 0x114   : > { %v1094_v26 = vpop.eup %1093  ;;  %782 = vst [vmem:[%s1522_s22] sm:$0xff] %v750_v0  ;;  %v753_v6 = vmul.f32 %v1092_v4, %v1417_v12  ;;  %1113 = vpow2.f32 %v938_v45  ;;  %v926_v45 = vmul.f32 -1.442695, %v1534_v25  ;;  %v1586_v40 = vadd.f32 %v1394_v56, %v515_v18 }
 0x115   : > { %v1096_v30 = vpop.eup %1095  ;;  %798 = vst [vmem:[%s1522_s22 + $0x80] sm:$0xff] %v766_v22  ;;  %v769_v11 = vmul.f32 %v1094_v26, %v1423_v16  ;;  %1115 = vpow2.f32 %v927_v51 }
 0x116   : > { %v1098_v35 = vpop.eup %1097  ;;  %785 = vst [vmem:[%s1522_s22 + $0x18] sm:$0xff] %v753_v6  ;;  %v751_v12 = vmul.f32 %v1096_v30, %v1426_v17  ;;  %1117 = vpow2.f32 %v943_v60  ;;  %v942_v17 = vmul.f32 -1.442695, %v1540_v28  ;;  %v1581_v6 = vadd.f32 %v1394_v56, %v499_v13 }
 0x117   : > { %v1100_v44 = vpop.eup %1099  ;;  %801 = vst [vmem:[%s1522_s22 + $0x98] sm:$0xff] %v769_v11  ;;  %v767_v16 = vmul.f32 %v1098_v35, %v1431_v20  ;;  %1119 = vpow2.f32 %v925_v23  ;;  %v931_v20 = vmul.f32 -1.442695, %v1546_v34  ;;  %v518_v23 = vmul.f32 %v1497_v47, %v1389_v54 }
 0x118   : > { %v1102_v46 = vpop.eup %1101  ;;  %783 = vst [vmem:[%s1522_s22 + $0x8] sm:$0xff] %v751_v12  ;;  %v756_v49 = vmul.f32 %v1100_v44, %v1440_v32  ;;  %1121 = vpow2.f32 %v941_v27  ;;  %v947_v32 = vmul.f32 -1.442695, %v1552_v43  ;;  %v516_v11 = vmul.f32 %v1389_v54, %v1503_v53 }
 0x119   : > { %v1104_v50 = vpop.eup %1103  ;;  %799 = vst [vmem:[%s1522_s22 + $0x88] sm:$0xff] %v767_v16  ;;  %v772_v51 = vmul.f32 %v1102_v46, %v1445_v37  ;;  %1123 = vpow2.f32 %v928_v33  ;;  %v1591_v35 = vadd.f32 %v1394_v56, %v502_v5  ;;  %v1594_v48 = vadd.f32 %v1394_v56, %v518_v23 }
 0x11a   : > { %v1106_v52 = vpop.eup %1105  ;;  %788 = vst [vmem:[%s1522_s22 + $0x30] sm:$0xff] %v756_v49  ;;  %v754_v55 = vmul.f32 %v1104_v50, %v1448_v38  ;;  %1125 = vpow2.f32 %v944_v36  ;;  %v1598_v54 = vadd.f32 %v1394_v56, %v500_v39  ;;  %v945_v49 = vmul.f32 -1.442695, %v1586_v40 }
 0x11b   : > { %v1108_v59 = vpop.eup %1107  ;;  %804 = vst [vmem:[%s1522_s22 + $0xb0] sm:$0xff] %v772_v51  ;;  %v770_v60 = vmul.f32 %v1106_v52, %v1452_v41  ;;  %1127 = vpow2.f32 %v926_v45  ;;  %v929_v45 = vmul.f32 -1.442695, %v1581_v6 }
 0x11c   : > { %v1110_v57 = vpop.eup %1109  ;;  %786 = vst [vmem:[%s1522_s22 + $0x20] sm:$0xff] %v754_v55  ;;  %v757_v37 = vmul.f32 %v1108_v59, %v1455_v42  ;;  %1129 = vpow2.f32 %v942_v17  ;;  %v1602_v17 = vadd.f32 %v1394_v56, %v516_v11  ;;  %v930_v56 = vmul.f32 -1.442695, %v1598_v54 }
 0x11d   : > { %v1112_v61 = vpop.eup %1111  ;;  %802 = vst [vmem:[%s1522_s22 + $0xa0] sm:$0xff] %v770_v60  ;;  %v677_v1 = vadd.f32 1.0, %v1110_v57  ;;  %1131 = vpow2.f32 %v931_v20  ;;  %v932_v20 = vmul.f32 -1.442695, %v1591_v35 }
 0x11e   : > { %v1114_v3 = vpop.eup %1113  ;;  %789 = vst [vmem:[%s1522_s22 + $0x38] sm:$0xff] %v757_v37  ;;  %v659_v38 = vadd.f32 1.0, %v1112_v61  ;;  %1133 = vpow2.f32 %v947_v32  ;;  %v948_v32 = vmul.f32 -1.442695, %v1594_v48 }
 0x11f   : > { %v1116_v7 = vpop.eup %1115  ;;  %1135 = vrcp.f32 %v677_v1  ;;  %v675_v58 = vadd.f32 1.0, %v1114_v3 }
 0x120   : > { %v1118_v10 = vpop.eup %1117  ;;  %1137 = vrcp.f32 %v659_v38  ;;  %v664_v41 = vadd.f32 1.0, %v1116_v7 }
 0x121   : > { %v1120_v62 = vpop.eup %1119  ;;  %1139 = vrcp.f32 %v675_v58  ;;  %v680_v42 = vadd.f32 1.0, %v1118_v10 }
 0x122   : > { %v1122_v19 = vpop.eup %1121  ;;  %1141 = vrcp.f32 %v664_v41  ;;  %v662_v0 = vadd.f32 1.0, %v1120_v62 }
 0x123   : > { %v1124_v4 = vpop.eup %1123  ;;  %1143 = vrcp.f32 %v680_v42  ;;  %v678_v22 = vadd.f32 1.0, %v1122_v19 }
 0x124   : > { %v1126_v26 = vpop.eup %1125  ;;  %1145 = vrcp.f32 %v662_v0  ;;  %v665_v31 = vadd.f32 1.0, %v1124_v4 }
 0x125   : > { %v1128_v27 = vpop.eup %1127  ;;  %1147 = vrcp.f32 %v678_v22  ;;  %v681_v30 = vadd.f32 1.0, %v1126_v26 }
 0x126   : > { %v1130_v33 = vpop.eup %1129  ;;  %1149 = vrcp.f32 %v665_v31  ;;  %v663_v47 = vadd.f32 1.0, %v1128_v27 }
 0x127   : > { %v1132_v12 = vpop.eup %1131  ;;  %1151 = vrcp.f32 %v681_v30  ;;  %v679_v36 = vadd.f32 1.0, %v1130_v33 }
 0x128   : > { %v1134_v44 = vpop.eup %1133  ;;  %1153 = vrcp.f32 %v663_v47  ;;  %v668_v16 = vadd.f32 1.0, %v1132_v12 }
 0x129   : > { %v1136_v53 = vpop.eup %1135  ;;  %1155 = vrcp.f32 %v679_v36  ;;  %v684_v46 = vadd.f32 1.0, %v1134_v44 }
 0x12a   : > { %v1138_v50 = vpop.eup %1137  ;;  %v773_v51 = vmul.f32 %v1136_v53, %v1466_v9  ;;  %1157 = vrcp.f32 %v668_v16 }
 0x12b   : > { %v1140_v52 = vpop.eup %1139  ;;  %v755_v55 = vmul.f32 %v1138_v50, %v1470_v15  ;;  %1159 = vrcp.f32 %v684_v46  ;;  %v946_v15 = vmul.f32 -1.442695, %v1602_v17 }
 0x12c   : > { %v1142_v59 = vpop.eup %1141  ;;  %805 = vst [vmem:[%s1522_s22 + $0xb8] sm:$0xff] %v773_v51  ;;  %v771_v60 = vmul.f32 %v1140_v52, %v1473_v21  ;;  %1161 = vpow2.f32 %v929_v45 }
 0x12d   : > { %v1144_v9 = vpop.eup %1143  ;;  %787 = vst [vmem:[%s1522_s22 + $0x28] sm:$0xff] %v755_v55  ;;  %v760_v57 = vmul.f32 %v1142_v59, %v1477_v24  ;;  %1163 = vpow2.f32 %v945_v49 }
 0x12e   : > { %v1146_v37 = vpop.eup %1145  ;;  %803 = vst [vmem:[%s1522_s22 + $0xa8] sm:$0xff] %v771_v60  ;;  %v776_v61 = vmul.f32 %v1144_v9, %v1481_v29  ;;  %1165 = vpow2.f32 %v932_v20 }
 0x12f   : > { %v1148_v1 = vpop.eup %1147  ;;  %792 = vst [vmem:[%s1522_s22 + $0x50] sm:$0xff] %v760_v57  ;;  %v758_v21 = vmul.f32 %v1146_v37, %v1508_v2  ;;  %1167 = vpow2.f32 %v948_v32 }
 0x130   : > { %v1150_v3 = vpop.eup %1149  ;;  %808 = vst [vmem:[%s1522_s22 + $0xd0] sm:$0xff] %v776_v61  ;;  %v774_v24 = vmul.f32 %v1148_v1, %v1513_v8  ;;  %1169 = vpow2.f32 %v930_v56 }
 0x131   : > { %v1152_v38 = vpop.eup %1151  ;;  %790 = vst [vmem:[%s1522_s22 + $0x40] sm:$0xff] %v758_v21  ;;  %v761_v7 = vmul.f32 %v1150_v3, %v1518_v14  ;;  %1171 = vpow2.f32 %v946_v15 }
 0x132   : > { %v1154_v29 = vpop.eup %1153  ;;  %806 = vst [vmem:[%s1522_s22 + $0xc0] sm:$0xff] %v774_v24  ;;  %v777_v58 = vmul.f32 %v1152_v38, %v1527_v63 }
 0x133   : > { %v1156_v2 = vpop.eup %1155  ;;  %793 = vst [vmem:[%s1522_s22 + $0x58] sm:$0xff] %v761_v7  ;;  %v759_v10 = vmul.f32 %v1154_v29, %v1534_v25 }
 0x134   : > { %v1158_v41 = vpop.eup %1157  ;;  %809 = vst [vmem:[%s1522_s22 + $0xd8] sm:$0xff] %v777_v58  ;;  %v775_v8 = vmul.f32 %v1156_v2, %v1540_v28 }
 0x135   : > { %v1160_v13 = vpop.eup %1159  ;;  %791 = vst [vmem:[%s1522_s22 + $0x48] sm:$0xff] %v759_v10  ;;  %v764_v62 = vmul.f32 %v1158_v41, %v1546_v34 }
 0x136   : > { %v1162_v14 = vpop.eup %1161  ;;  %807 = vst [vmem:[%s1522_s22 + $0xc8] sm:$0xff] %v775_v8  ;;  %v780_v42 = vmul.f32 %v1160_v13, %v1552_v43 }
 0x137   : > { %v1164_v18 = vpop.eup %1163  ;;  %796 = vst [vmem:[%s1522_s22 + $0x70] sm:$0xff] %v764_v62  ;;  %v666_v63 = vadd.f32 1.0, %v1162_v14 }
 0x138   : > { %v1166_v19 = vpop.eup %1165  ;;  %812 = vst [vmem:[%s1522_s22 + $0xf0] sm:$0xff] %v780_v42  ;;  %v682_v0 = vadd.f32 1.0, %v1164_v18 }
 0x139   : > { %v1168_v5 = vpop.eup %1167  ;;  %1173 = vrcp.f32 %v666_v63  ;;  %v669_v25 = vadd.f32 1.0, %v1166_v19 }
 0x13a   : > { %v1170_v4 = vpop.eup %1169  ;;  %1175 = vrcp.f32 %v682_v0  ;;  %v685_v28 = vadd.f32 1.0, %v1168_v5 }
 0x13b   : > { %v1172_v34 = vpop.eup %1171  ;;  %1177 = vrcp.f32 %v669_v25  ;;  %v667_v22 = vadd.f32 1.0, %v1170_v4 }
 0x13c   : > { %1179 = vrcp.f32 %v685_v28  ;;  %v683_v43 = vadd.f32 1.0, %v1172_v34 }
 0x13d   : > { %1181 = vrcp.f32 %v667_v22 }
 0x13e   : > { %1183 = vrcp.f32 %v683_v43 }
 0x143   : > { %v1174_v23 = vpop.eup %1173 }
 0x144   : > { %v1176_v26 = vpop.eup %1175  ;;  %v762_v31 = vmul.f32 %v1174_v23, %v1581_v6 }
 0x145   : > { %v1178_v39 = vpop.eup %1177  ;;  %v778_v27 = vmul.f32 %v1176_v26, %v1586_v40 }
 0x146   : > { %v1180_v30 = vpop.eup %1179  ;;  %794 = vst [vmem:[%s1522_s22 + $0x60] sm:$0xff] %v762_v31  ;;  %v765_v11 = vmul.f32 %v1178_v39, %v1591_v35 }
 0x147   : > { %v1182_v33 = vpop.eup %1181  ;;  %810 = vst [vmem:[%s1522_s22 + $0xe0] sm:$0xff] %v778_v27  ;;  %v781_v47 = vmul.f32 %v1180_v30, %v1594_v48 }
 0x148   : > { %v1184_v12 = vpop.eup %1183  ;;  %797 = vst [vmem:[%s1522_s22 + $0x78] sm:$0xff] %v765_v11  ;;  %v763_v6 = vmul.f32 %v1182_v33, %v1598_v54 }
 0x149   : > { %813 = vst [vmem:[%s1522_s22 + $0xf8] sm:$0xff] %v781_v47  ;;  %v779_v40 = vmul.f32 %v1184_v12, %v1602_v17 }
 0x14a   : > { %795 = vst [vmem:[%s1522_s22 + $0x68] sm:$0xff] %v763_v6 }
 0x14b   : > { %811 = vst [vmem:[%s1522_s22 + $0xe8] sm:$0xff] %v779_v40 }
 0x14c   : > { %1198 = shalt.err (!%p1195_p3)
}
 0x14d   : > { %s1199_s9 = scalar_lea.hbm %s1647_s19, 4096  ;;  %s1203_s12 = scalar_lea.hbm %s1702_s4, 8192 }
 0x14e   : > { %p1200_p4 = scmp.ne.s32.totalorder %s1647_s19, %s1199_s9  ;;  %p1204_p9 = scmp.lt.u32.totalorder %s1647_s19, %s1702_s4 }
 0x14f   : > { %p1205_p10 = scmp.lt.u32.totalorder %s1203_s12, %s1199_s9  ;;  %p1207_p12 = scmp.lt.u32.totalorder %s1199_s9, %s1647_s19 }
 0x150   : > { %p1201_p7 = pnand %p1200_p4, %p1316_p5 }
 0x151   : > { %p1206_p11 = por %p1205_p10, %p1204_p9 }
 0x152   : > { %p1202_p8 = pneg %p1201_p7 }
 0x153   : > { %p1208_p13 = por %p1207_p12, %p1206_p11 }
 0x155   : > { %p1209_p0 = pnand %p1208_p13, %p1202_p8 }
 0x157   : > { %1212 = shalt.err (!%p1209_p0)
}
 0x158   : > { %s1251_s20 = smov 128   ;;  %s1252_s22 = smov 8  }
 0x159   : > { %1013 = dma.vmem_to_hbm [thread:$0]  (%p1316_p5), %s1649_s27, 4096, %s1647_s19, %s1657_s30, %s1251_s20, %s1251_s20, %s1252_s22  }
 0x15a PF: > { %p1019_p1 = scmp.ge.s32.totalorder %s1247_s18, 2  ;;  %s843_s23 = sand.u32 1, %s1235_s15  }
 0x15b   : > { %s844_s28 = scalar_lea.sflag [#allocation3], %s843_s23 }
 0x15c   : > { %p1016_p2 = pnand %p1019_p1, %p1320_p6 }
 0x15e   : > { %1230 = dma.done.wait (!%p1016_p2), %s844_s28, 4096  }
 0x15f   : > { %1232 = vsyncadd (!%p1016_p2), %s844_s28, 4294963200  ;;  %p14_p3 = scmp.ge.s32.totalorder %s1303_s21, 4   ;;  %s1705_s15 = smov %s1239_s16 }
 0x160   : > { %s1706_s16 = smov %s1243_s17  ;;  %s1707_s17 = smov %s1314_s24 }
 0x161   : > { %s1708_s18 = smov %s1303_s21  ;;  %16 = sbr.rel (!%p14_p3) target bundleno = 3 (0x3), region = 71 }
 0x168   :  { %849 = vsyncpa [#allocation3], 1 }
 0x169   :  { %851 = vsyncpa [#allocation3 + $0x1], 1 }

</bundles_post_ra>
